<compile_context>
chip_gen: v7x
topology: tpu7x:2x2x1
jax: 0.10.0
libtpu: 0.0.40
codegen_flags: <defaults>
</compile_context>

<pallas_src>
import jax
import jax.numpy as jnp
from jax.experimental import pallas as pl
from jax.experimental.pallas import tpu as pltpu

_LANES = 256            # lane-dense output: multiple of 128
_MAX_BLOCK_ROWS = 2048  # 2048 x 256 f32 = 2 MiB/block -> ~86% HBM roofline
_LN2 = 0.6931471805599453


def _sublanes_for(dtype) -> int:
    # native sublane tile per 32-bit vreg row: 8 for 4-byte, 16 for 2-byte,
    # 32 for 1-byte dtypes (keeps stores unmasked / natively packed)
    itemsize = jnp.dtype(dtype).itemsize
    return {4: 8, 2: 16, 1: 32}.get(itemsize, 8)


def _asinh_kernel(x_ref, o_ref):
    x = x_ref[...].astype(jnp.float32)
    ax = jnp.abs(x)
    ax2 = ax * ax

    # small / moderate |x|:  asinh(|x|) = log1p(t),
    #   t = |x| + |x|^2 / (1 + sqrt(|x|^2 + 1))
    # log1p via the Kahan same-precision trick (log / div / select only).
    t = ax + ax2 / (1.0 + jnp.sqrt(ax2 + 1.0))
    u = 1.0 + t

    big = ax > jnp.float32(1e18)

    # One shared log for both branches (EUP saving):
    #   small branch needs log(u); huge branch needs log(|x|) + ln2.
    lg = jnp.log(jnp.where(big, ax, u))

    y_small = jnp.where(u == 1.0, t, lg * (t / (u - 1.0)))
    y_large = lg + jnp.float32(_LN2)
    y = jnp.where(big, y_large, y_small)

    # copysign via sign-bit transfer: 2 integer VALU ops, keeps -0.0 -> -0.0
    sign_bits = pltpu.bitcast(x, jnp.uint32) & jnp.uint32(0x80000000)
    y = pltpu.bitcast(pltpu.bitcast(y, jnp.uint32) | sign_bits, jnp.float32)

    o_ref[...] = y.astype(o_ref.dtype)


@jax.jit
def asinh_pallas(x):
    orig_shape = x.shape
    orig_dtype = x.dtype

    flat = x.reshape(-1)
    n = flat.shape[0]

    # Static (trace-time) tiling arithmetic.
    sublanes = _sublanes_for(orig_dtype)
    rows = -(-n // _LANES)
    rows = -(-rows // sublanes) * sublanes        # pad only to the sublane tile
    padded_n = rows * _LANES

    block_rows = min(rows, _MAX_BLOCK_ROWS)       # multiple of sublanes either way
    grid = pl.cdiv(rows, block_rows)              # ragged last block allowed

    if padded_n != n:                             # statically skipped when clean
        flat = jnp.pad(flat, (0, padded_n - n))
    x2d = flat.reshape(rows, _LANES)

    out2d = pl.pallas_call(
        _asinh_kernel,
        out_shape=jax.ShapeDtypeStruct((rows, _LANES), orig_dtype),
        grid=(grid,),
        in_specs=[pl.BlockSpec((block_rows, _LANES), lambda i: (i, 0))],
        out_specs=pl.BlockSpec((block_rows, _LANES), lambda i: (i, 0)),
        compiler_params=pltpu.CompilerParams(
            dimension_semantics=("parallel",),
            vmem_limit_bytes=32 * 1024 * 1024,    # fits every generation's VMEM
        ),
    )(x2d)

    out = out2d.reshape(-1)
    if padded_n != n:
        out = out[:n]
    return out.reshape(orig_shape)


if __name__ == "__main__":
    key = jax.random.PRNGKey(0)
    x = jax.random.normal(key, (2, 4, 16, 16), dtype=jnp.float32) * 3.0

    y = asinh_pallas(x)
    jax.block_until_ready(y)

    # sanity check vs. jnp.arcsinh (includes negatives, zeros, small values)
    ref = jnp.arcsinh(x)
    assert y.shape == x.shape and y.dtype == x.dtype
    assert jnp.max(jnp.abs(y - ref)) < 1e-5

    # extra edge cases: tiny, zero, negative zero, large
    xe = jnp.array([0.0, -0.0, 1e-9, -1e-9, 1e-3, -1e-3, 1e20, -1e20, 5.0, -5.0],
                   dtype=jnp.float32).reshape(1, 1, 1, 10)
    ye = asinh_pallas(xe)
    jax.block_until_ready(ye)
    assert jnp.max(jnp.abs(ye - jnp.arcsinh(xe))) < 1e-4

    print("KERNEL_OK")
</pallas_src>

<mosaic_0001>
module attributes {stable_mosaic.version = 11 : i64} {
  func.func @_asinh_kernel(%arg0: i32, %arg1: memref<8x256xf32, #tpu.memory_space<vmem>>, %arg2: memref<8x256xf32, #tpu.memory_space<vmem>>) attributes {dimension_semantics = [#tpu.dimension_semantics<parallel>], iteration_bounds = array<i64: 1>, scalar_prefetch = 0 : i64, scratch_operands = 0 : i64, tpu.core_type = #tpu.core_type<tc>, window_params = [{transform_indices = @transform_0, window_bounds = array<i64: 8, 256>}, {transform_indices = @transform_1, window_bounds = array<i64: 8, 256>}]} {
    %c0 = arith.constant 0 : index
    %c0_0 = arith.constant 0 : index
    %0 = vector.load %arg1[%c0, %c0_0] : memref<8x256xf32, #tpu.memory_space<vmem>>, vector<8x256xf32>
    %1 = math.absf %0 : vector<8x256xf32>
    %2 = arith.mulf %1, %1 : vector<8x256xf32>
    %cst = arith.constant 1.000000e+00 : f32
    %3 = vector.broadcast %cst : f32 to vector<8x256xf32>
    %4 = arith.addf %2, %3 : vector<8x256xf32>
    %5 = math.sqrt %4 : vector<8x256xf32>
    %cst_1 = arith.constant 1.000000e+00 : f32
    %6 = vector.broadcast %cst_1 : f32 to vector<8x256xf32>
    %7 = arith.addf %6, %5 : vector<8x256xf32>
    %8 = arith.divf %2, %7 : vector<8x256xf32>
    %9 = arith.addf %1, %8 : vector<8x256xf32>
    %cst_2 = arith.constant 1.000000e+00 : f32
    %10 = vector.broadcast %cst_2 : f32 to vector<8x256xf32>
    %11 = arith.addf %10, %9 : vector<8x256xf32>
    %cst_3 = arith.constant 9.99999984E+17 : f32
    %12 = vector.broadcast %cst_3 : f32 to vector<8x256xf32>
    %13 = arith.cmpf ogt, %1, %12 : vector<8x256xf32>
    %14 = arith.select %13, %1, %11 : vector<8x256xi1>, vector<8x256xf32>
    %15 = math.log %14 : vector<8x256xf32>
    %cst_4 = arith.constant 1.000000e+00 : f32
    %16 = vector.broadcast %cst_4 : f32 to vector<8x256xf32>
    %17 = arith.cmpf oeq, %11, %16 : vector<8x256xf32>
    %cst_5 = arith.constant 1.000000e+00 : f32
    %18 = vector.broadcast %cst_5 : f32 to vector<8x256xf32>
    %19 = arith.subf %11, %18 : vector<8x256xf32>
    %20 = arith.divf %9, %19 : vector<8x256xf32>
    %21 = arith.mulf %15, %20 : vector<8x256xf32>
    %22 = arith.select %17, %9, %21 : vector<8x256xi1>, vector<8x256xf32>
    %cst_6 = arith.constant 0.693147182 : f32
    %23 = vector.broadcast %cst_6 : f32 to vector<8x256xf32>
    %24 = arith.addf %15, %23 : vector<8x256xf32>
    %25 = arith.select %13, %24, %22 : vector<8x256xi1>, vector<8x256xf32>
    %26 = tpu.bitcast %0 : vector<8x256xf32> -> vector<8x256xi32>
    %c-2147483648_i32 = arith.constant -2147483648 : i32
    %27 = vector.broadcast %c-2147483648_i32 : i32 to vector<8x256xi32>
    %28 = arith.andi %26, %27 : vector<8x256xi32>
    %29 = tpu.bitcast %25 : vector<8x256xf32> -> vector<8x256xi32>
    %30 = arith.ori %29, %28 : vector<8x256xi32>
    %31 = tpu.bitcast %30 : vector<8x256xi32> -> vector<8x256xf32>
    %c0_7 = arith.constant 0 : index
    %c0_8 = arith.constant 0 : index
    %32 = vector.load %arg2[%c0_7, %c0_8] : memref<8x256xf32, #tpu.memory_space<vmem>>, vector<8x256xf32>
    tpu.vector_store %arg2[%c0_7, %c0_8], %31 {strides = array<i32>} : memref<8x256xf32, #tpu.memory_space<vmem>>, vector<8x256xf32>,
    return
  }
  func.func @transform_0(%arg0: i32) -> (i32, i32) {
    %c0_i32 = arith.constant 0 : i32
    %c0_i32_0 = arith.constant 0 : i32
    return %arg0, %c0_i32 : i32, i32
  }
  func.func @transform_1(%arg0: i32) -> (i32, i32) {
    %c0_i32 = arith.constant 0 : i32
    %c0_i32_0 = arith.constant 0 : i32
    return %arg0, %c0_i32 : i32, i32
  }
}

</mosaic_0001>

<bundles_post_ra>
// kernel: asinh_pallas.1
= control target key start
LH: loop header
LB: loop body
LE: loop exit
PB: predicated region body
PF: predicated region fallthrough
CT: control target
= control target key end

     0   :  { %s150_s0 = inlined_call_operand.vmem [shape: f32[8,256], index: 0, kind: input, shape index: {}]   ;;  %s151_s1 = inlined_call_operand.vmem [shape: f32[8,256], index: 1, kind: output, shape index: {}]  }
   0x1   :  { %v111_v0 = vld [vmem:[%s150_s0] sm:$0xff]  ;;  %v116_v1 = vld [vmem:[%s150_s0 + $0x8] sm:$0xff] }
   0x2   :  { %v119_v2 = vand.u32 2147483647, %v111_v0  ;;  %v122_v3 = vand.u32 2147483647, %v116_v1  ;;  %v66_v41 = vand.u32 2147483648, %v111_v0  ;;  %v67_v46 = vand.u32 2147483648, %v116_v1 }
   0x4   :  { %v12_v4 = vmul.f32 %v119_v2, %v119_v2  ;;  %v13_v5 = vmul.f32 %v122_v3, %v122_v3  ;;  %vm40_vm4 = vcmp.gt.f32.partialorder %v119_v2, 1e+18  ;;  %vm41_vm5 = vcmp.gt.f32.partialorder %v122_v3, 1e+18 }
   0x6   :  { %v14_v6 = vadd.f32 1.0, %v12_v4  ;;  %v15_v7 = vadd.f32 1.0, %v13_v5 }
   0x8   :  { %82 = vrsqrt.f32 %v14_v6  ;;  %vm18_vm0 = vcmp.eq.f32.partialorder %v14_v6, inf  ;;  %v21_v9 = vand.u32 2147483648, %v14_v6  ;;  %vm20_vm1 = vcmp.eq.f32.partialorder %v14_v6, 0.0 }
   0x9   :  { %84 = vrsqrt.f32 %v15_v7  ;;  %vm25_vm2 = vcmp.eq.f32.partialorder %v15_v7, inf  ;;  %v28_v12 = vand.u32 2147483648, %v15_v7  ;;  %vm27_vm3 = vcmp.eq.f32.partialorder %v15_v7, 0.0 }
  0x12   :  { %v83_v8 = vpop.eup %82 }
  0x13   :  { %v85_v10 = vpop.eup %84  ;;  %v17_v11 = vmul.f32 %v83_v8, %v14_v6 }
  0x14   :  { %v24_v13 = vmul.f32 %v85_v10, %v15_v7 }
  0x15   :  { %v19_v14 = vsel %vm18_vm0, %v14_v6, %v17_v11 }
  0x16   :  { %v22_v15 = vsel %vm20_vm1, %v21_v9, %v19_v14  ;;  %v26_v16 = vsel %vm25_vm2, %v15_v7, %v24_v13 }
  0x17   :  { %v30_v17 = vadd.f32 1.0, %v22_v15  ;;  %v29_v18 = vsel %vm27_vm3, %v28_v12, %v26_v16 }
  0x18   :  { %v31_v19 = vadd.f32 1.0, %v29_v18 }
  0x19   :  { %86 = vrcp.f32 %v30_v17 }
  0x1a   :  { %88 = vrcp.f32 %v31_v19 }
  0x23   :  { %v87_v20 = vpop.eup %86 }
  0x24   :  { %v89_v21 = vpop.eup %88  ;;  %v33_v22 = vmul.f32 %v87_v20, %v12_v4 }
  0x25   :  { %v35_v23 = vmul.f32 %v89_v21, %v13_v5 }
  0x26   :  { %v36_v24 = vadd.f32 %v33_v22, %v119_v2 }
  0x27   :  { %v37_v25 = vadd.f32 %v35_v23, %v122_v3 }
  0x28   :  { %v38_v26 = vadd.f32 1.0, %v36_v24 }
  0x29   :  { %v39_v27 = vadd.f32 1.0, %v37_v25 }
  0x2a   :  { %v42_v28 = vsel %vm40_vm4, %v119_v2, %v38_v26  ;;  %v80_v29 = vadd.f32 -1.0, %v38_v26  ;;  %vm48_vm6 = vcmp.eq.f32.partialorder %v38_v26, 1.0 }
  0x2b   :  { %90 = vlog2.f32 %v42_v28  ;;  %v43_v30 = vsel %vm41_vm5, %v122_v3, %v39_v27  ;;  %v81_v31 = vadd.f32 -1.0, %v39_v27  ;;  %vm49_vm7 = vcmp.eq.f32.partialorder %v39_v27, 1.0 }
  0x2c   :  { %92 = vrcp.f32 %v80_v29 }
  0x2d   :  { %94 = vlog2.f32 %v43_v30 }
  0x2e   :  { %96 = vrcp.f32 %v81_v31 }
  0x35   :  { %v91_v32 = vpop.eup %90 }
  0x36   :  { %v93_v33 = vpop.eup %92  ;;  %v45_v34 = vmul.f32 0.6931472, %v91_v32 }
  0x37   :  { %v95_v35 = vpop.eup %94  ;;  %v53_v36 = vmul.f32 %v93_v33, %v36_v24 }
  0x38   :  { %v97_v37 = vpop.eup %96  ;;  %v60_v38 = vadd.f32 0.6931472, %v45_v34  ;;  %v47_v39 = vmul.f32 0.6931472, %v95_v35 }
  0x39   :  { %v56_v40 = vmul.f32 %v53_v36, %v45_v34  ;;  %v55_v42 = vmul.f32 %v97_v37, %v37_v25 }
  0x3a   :  { %v61_v43 = vadd.f32 0.6931472, %v47_v39 }
  0x3b   :  { %v58_v44 = vsel %vm48_vm6, %v36_v24, %v56_v40  ;;  %v57_v45 = vmul.f32 %v55_v42, %v47_v39 }
  0x3c   :  { %v62_v47 = vsel %vm40_vm4, %v60_v38, %v58_v44 }
  0x3d   :  { %v70_v48 = vor.u32 %v66_v41, %v62_v47  ;;  %v59_v49 = vsel %vm49_vm7, %v37_v25, %v57_v45 }
  0x3e   :  { %v63_v50 = vsel %vm41_vm5, %v61_v43, %v59_v49 }
  0x3f   :  { %74 = vst [vmem:[%s151_s1] sm:$0xff] %v70_v48  ;;  %v71_v51 = vor.u32 %v67_v46, %v63_v50 }
  0x41   :  { %75 = vst [vmem:[%s151_s1 + $0x8] sm:$0xff] %v71_v51 }

</bundles_post_ra>
